<compile_context>
chip_gen: v5e
topology: v5e:2x2
jax: 0.10.0
libtpu: 0.0.40
codegen_flags: <defaults>
</compile_context>

<pallas_src>
import functools

import numpy as np
import jax
import jax.numpy as jnp
from jax.experimental import pallas as pl
from jax.experimental.pallas import tpu as pltpu


def _block_kernel(x_ref, w_ref, scale_ref, shift_ref, o_ref, *, B, H, W, Cin, Cout):
    """One grid step: B images in the folded (H, W*Cin) layout.

    x_ref:     (B, H, W*Cin)          bf16  inputs, lane index = w*Cin + ci
    w_ref:     (3*(W+2)*Cin, W*Cout)  bf16  banded conv weights,
                                            row = (dy*(W+2)+wx)*Cin+ci, col = w*Cout+co
    scale_ref: (1, W*Cout)            f32   folded BN scale (tiled over w)
    shift_ref: (1, W*Cout)            f32   folded BN shift (conv bias folded in)
    o_ref:     (B, Ho, Wo*Cout)       bf16  pooled output, lane index = w*Cout + co
    """
    WPC = (W + 2) * Cin
    Wo = W - 1
    zc = jnp.zeros((H, Cin), jnp.bfloat16)    # conv zero padding: left/right column
    zr = jnp.zeros((1, WPC), jnp.bfloat16)    # conv zero padding: top/bottom row

    # Short static loop over the images of this step keeps the f32 accumulator at
    # (H, W*Cout) = 32 KiB, so the epilogue stays inside the vreg file (no spills).
    for b in range(B):
        xb = x_ref[b]                                         # (H, W*Cin)
        xc = jnp.concatenate([zc, xb, zc], axis=-1)           # (H, (W+2)*Cin)  rows h
        top = jnp.concatenate([zr, xc[:H - 1, :]], axis=0)    # rows h-1 (zero padded)
        bot = jnp.concatenate([xc[1:, :], zr], axis=0)        # rows h+1 (zero padded)
        lhs = jnp.concatenate([top, xc, bot], axis=-1)        # (H, 3*(W+2)*Cin)

        # 3x3 conv over all W output columns of all H rows as ONE MXU matmul
        # (dx taps live in the banded weight matrix, dy taps in `lhs`).
        acc = jnp.dot(lhs, w_ref[...], preferred_element_type=jnp.float32)  # (H, W*Cout)

        # Folded BatchNorm (running stats) + conv bias, then ReLU (f32 on the VPU).
        y = jnp.maximum(acc * scale_ref[...] + shift_ref[...], 0.0)
        # Dropout2d is the identity in eval mode.

        # AvgPool2d 2x2 / stride 1 / pad 0, computed separably (2 adds, not 3).
        ws = y[:, :Wo * Cout] + y[:, Cout:Cout + Wo * Cout]   # pool along w (lane shift)
        p = (ws[:H - 1, :] + ws[1:, :]) * 0.25                # pool along h (row shift)

        o_ref[b] = p.astype(o_ref.dtype)                      # lane-dense bf16 store


def _num_tensorcores():
    """Best-effort TensorCores per device (v5e/v6e: 1; v3/v4/v5p/v7x: 2)."""
    try:
        kind = jax.devices()[0].device_kind.lower()
    except Exception:
        return 1
    if "lite" in kind or "v5e" in kind or "v6e" in kind or "v6" in kind:
        return 1
    if "v3" in kind or "v4" in kind or "v5p" in kind or "7" in kind:
        return 2
    return 1


def _pick_batch_tile(N, H, W, Cin, Cout, vmem_budget_bytes=24 << 20):
    """Largest batch tile whose double-buffered blocks fit a conservative VMEM
    budget (v7x only has 64 MiB physical VMEM), capped at 8 images/step to keep
    the unrolled in-kernel loop and live values small.  Single-TensorCore parts
    (v5e/v6e) prefer one big grid step; multi-TC parts keep the grid length a
    multiple of the core count so no core idles on a tail step."""
    Ho, Wo = H - 1, W - 1
    per_image = 2 * 2 * (H * W * Cin + Ho * Wo * Cout)                 # bf16 in+out, double-buffered
    fixed = 2 * 2 * (3 * (W + 2) * Cin * W * Cout) + 2 * 2 * 4 * W * Cout
    cap = max(1, min(N, (vmem_budget_bytes - fixed) // max(per_image, 1), 8))
    divisors = [d for d in range(1, cap + 1) if N % d == 0]
    ncores = _num_tensorcores()
    if ncores > 1:
        good = [d for d in divisors if (N // d) % ncores == 0]
        if good:
            return good[-1]
    return divisors[-1]


def block_forward(x_nchw, conv_w, conv_b, bn_gamma, bn_beta, bn_mean, bn_var,
                  eps=1e-5, batch_tile=None):
    """Eval-mode forward of `Block` (is_pool=True).  x_nchw: (N, Cin, H, W) f32.
    Returns (N, Cout, H-1, W-1) f32, matching the PyTorch module."""
    N, Cin, H, W = x_nchw.shape
    Cout = conv_w.shape[0]
    Ho, Wo = H - 1, W - 1
    Kb = 3 * (W + 2) * Cin            # matmul K: 3 dy-rows of (W+2) padded columns
    Nn = W * Cout                     # matmul N: all output columns x channels
    WoC = Wo * Cout

    if batch_tile is None:
        batch_tile = _pick_batch_tile(N, H, W, Cin, Cout)
    assert N % batch_tile == 0
    grid = (N // batch_tile,)

    # NCHW -> folded (N, H, W*Cin) bf16: contiguous DMA, lane-dense VMEM blocks.
    x_fold = jnp.transpose(x_nchw, (0, 2, 3, 1)).reshape(N, H, W * Cin).astype(jnp.bfloat16)

    # Banded conv weight: w_big[(dy, wx, ci), (w, co)] = conv_w[co, ci, dy, wx - w]
    # for 0 <= wx - w <= 2, else 0 (wx indexes the zero-padded input columns).
    P = (np.arange(W + 2)[None, :, None]
         == (np.arange(W)[None, None, :] + np.arange(3)[:, None, None])).astype(np.float32)
    w_big = jnp.einsum("xvw,oiyx->yviwo", P, conv_w).reshape(Kb, Nn).astype(jnp.bfloat16)

    # Fold conv bias + BatchNorm running stats into per-channel scale/shift,
    # tiled over the W output columns to match the (w*Cout + co) lane layout.
    scale_c = (bn_gamma / jnp.sqrt(bn_var + eps)).astype(jnp.float32)
    shift_c = ((conv_b - bn_mean) * scale_c + bn_beta).astype(jnp.float32)
    scale = jnp.tile(scale_c, W).reshape(1, Nn)
    shift = jnp.tile(shift_c, W).reshape(1, Nn)

    kernel = functools.partial(_block_kernel, B=batch_tile, H=H, W=W, Cin=Cin, Cout=Cout)

    cost = pl.CostEstimate(
        flops=2 * N * H * Kb * Nn,
        transcendentals=0,
        bytes_accessed=(N * H * W * Cin * 2      # bf16 input
                        + Kb * Nn * 2            # bf16 banded weights
                        + 2 * Nn * 4 * 2         # f32 scale/shift
                        + N * Ho * WoC * 2))     # bf16 output

    out_fold = pl.pallas_call(
        kernel,
        out_shape=jax.ShapeDtypeStruct((N, Ho, WoC), jnp.bfloat16),
        grid_spec=pltpu.PrefetchScalarGridSpec(
            num_scalar_prefetch=0,
            grid=grid,
            in_specs=[
                pl.BlockSpec((batch_tile, H, W * Cin), lambda b: (b, 0, 0)),
                pl.BlockSpec((Kb, Nn), lambda b: (0, 0)),
                pl.BlockSpec((1, Nn), lambda b: (0, 0)),
                pl.BlockSpec((1, Nn), lambda b: (0, 0)),
            ],
            out_specs=pl.BlockSpec((batch_tile, Ho, WoC), lambda b: (b, 0, 0)),
        ),
        compiler_params=pltpu.CompilerParams(dimension_semantics=("parallel",)),
        cost_estimate=cost,
    )(x_fold, w_big, scale, shift)

    # Unfold to NCHW f32 to match the PyTorch module's output.
    return jnp.transpose(out_fold.reshape(N, Ho, Wo, Cout), (0, 3, 1, 2)).astype(jnp.float32)


def _reference(x_nchw, conv_w, conv_b, bn_gamma, bn_beta, bn_mean, bn_var, eps=1e-5):
    """Pure-JAX reference (lax conv, f32) for correctness checking."""
    z = jax.lax.conv_general_dilated(
        x_nchw, conv_w, window_strides=(1, 1), padding=((1, 1), (1, 1)),
        dimension_numbers=("NCHW", "OIHW", "NCHW"))
    z = z + conv_b[None, :, None, None]
    s = bn_gamma / jnp.sqrt(bn_var + eps)
    z = z * s[None, :, None, None] + (bn_beta - bn_mean * s)[None, :, None, None]
    z = jnp.maximum(z, 0.0)
    return (z[:, :, :-1, :-1] + z[:, :, 1:, :-1] + z[:, :, :-1, 1:] + z[:, :, 1:, 1:]) * 0.25


if __name__ == "__main__":
    # Small shapes consistent with the module: batch=2, Cin=4, 16x16 spatial, Cout=32.
    N, Cin, H, W, Cout = 2, 4, 16, 16, 32

    keys = jax.random.split(jax.random.PRNGKey(0), 7)
    x = jax.random.normal(keys[0], (N, Cin, H, W), dtype=jnp.float32)

    # Deterministic parameter init (Conv2d-style weight/bias, non-trivial BN stats).
    fan_in = Cin * 3 * 3
    bound = 1.0 / float(np.sqrt(fan_in))
    conv_w = jax.random.uniform(keys[1], (Cout, Cin, 3, 3), jnp.float32, -bound, bound)
    conv_b = jax.random.uniform(keys[2], (Cout,), jnp.float32, -bound, bound)
    bn_gamma = 1.0 + 0.1 * jax.random.normal(keys[3], (Cout,), jnp.float32)
    bn_beta = 0.1 * jax.random.normal(keys[4], (Cout,), jnp.float32)
    bn_mean = 0.1 * jax.random.normal(keys[5], (Cout,), jnp.float32)
    bn_var = 1.0 + 0.2 * jax.random.uniform(keys[6], (Cout,), jnp.float32)
    # TODO(synk): training-mode BatchNorm (batch statistics), Dropout2d random channel
    # masking, and the is_pool=False variant are not implemented; this reproduces the
    # default eval-mode forward.

    out = block_forward(x, conv_w, conv_b, bn_gamma, bn_beta, bn_mean, bn_var)
    out = jax.block_until_ready(out)

    ref = _reference(x, conv_w, conv_b, bn_gamma, bn_beta, bn_mean, bn_var)
    assert out.shape == (N, Cout, H - 1, W - 1), out.shape
    # bf16 matmul operands + bf16 kernel output (f32 accumulation/epilogue) ->
    # tolerance reflects bf16 rounding vs the f32 reference.
    assert jnp.allclose(out, ref, atol=4e-2, rtol=4e-2), \
        float(jnp.max(jnp.abs(out - ref)))

    print("KERNEL_OK")
</pallas_src>

<mosaic_0001>
module attributes {stable_mosaic.version = 11 : i64} {
  func.func @_block_kernel(%arg0: i32, %arg1: memref<2x16x64xbf16, #tpu.memory_space<vmem>>, %arg2: memref<216x512xbf16, #tpu.memory_space<vmem>>, %arg3: memref<1x512xf32, #tpu.memory_space<vmem>>, %arg4: memref<1x512xf32, #tpu.memory_space<vmem>>, %arg5: memref<2x15x480xbf16, #tpu.memory_space<vmem>>) attributes {dimension_semantics = [#tpu.dimension_semantics<parallel>], iteration_bounds = array<i64: 1>, scalar_prefetch = 0 : i64, scratch_operands = 0 : i64, tpu.core_type = #tpu.core_type<tc>, window_params = [{transform_indices = @transform_0, window_bounds = array<i64: 2, 16, 64>}, {pipeline_mode = #tpu.pipeline_mode<synchronous>, transform_indices = @transform_1, window_bounds = array<i64: 216, 512>}, {pipeline_mode = #tpu.pipeline_mode<synchronous>, transform_indices = @transform_2, window_bounds = array<i64: 1, 512>}, {pipeline_mode = #tpu.pipeline_mode<synchronous>, transform_indices = @transform_3, window_bounds = array<i64: 1, 512>}, {transform_indices = @transform_4, window_bounds = array<i64: 2, 15, 480>}]} {
    %cst = arith.constant 0.000000e+00 : bf16
    %0 = vector.broadcast %cst : bf16 to vector<16x4xbf16>
    %cst_0 = arith.constant 0.000000e+00 : bf16
    %1 = vector.broadcast %cst_0 : bf16 to vector<1x72xbf16>
    %c0 = arith.constant 0 : index
    %c0_1 = arith.constant 0 : index
    %c0_2 = arith.constant 0 : index
    %2 = vector.load %arg1[%c0, %c0_1, %c0_2] : memref<2x16x64xbf16, #tpu.memory_space<vmem>>, vector<1x16x64xbf16>
    %3 = vector.shape_cast %2 : vector<1x16x64xbf16> to vector<16x64xbf16>
    %4 = tpu.concatenate %0, %3, %0 in 1 : vector<16x4xbf16>, vector<16x64xbf16>, vector<16x4xbf16> -> vector<16x72xbf16>
    %5 = vector.extract_strided_slice %4 {offsets = [0, 0], sizes = [15, 72], strides = [1, 1]} : vector<16x72xbf16> to vector<15x72xbf16>
    %6 = tpu.concatenate %1, %5 in 0 : vector<1x72xbf16>, vector<15x72xbf16> -> vector<16x72xbf16>
    %7 = vector.extract_strided_slice %4 {offsets = [1, 0], sizes = [15, 72], strides = [1, 1]} : vector<16x72xbf16> to vector<15x72xbf16>
    %8 = tpu.concatenate %7, %1 in 0 : vector<15x72xbf16>, vector<1x72xbf16> -> vector<16x72xbf16>
    %9 = tpu.concatenate %6, %4, %8 in 1 : vector<16x72xbf16>, vector<16x72xbf16>, vector<16x72xbf16> -> vector<16x216xbf16>
    %c0_3 = arith.constant 0 : index
    %c0_4 = arith.constant 0 : index
    %10 = vector.load %arg2[%c0_3, %c0_4] : memref<216x512xbf16, #tpu.memory_space<vmem>>, vector<216x512xbf16>
    %cst_5 = arith.constant dense<0.000000e+00> : vector<16x512xf32>
    %11 = tpu.matmul %9, %10, %cst_5 {dimension_numbers = #tpu.dot_dimension_numbers<[1], [0], [0], [1], [0, 0, 1, 1], [], []>} : vector<16x216xbf16>, vector<216x512xbf16>, vector<16x512xf32> -> vector<16x512xf32>
    %c0_6 = arith.constant 0 : index
    %c0_7 = arith.constant 0 : index
    %12 = vector.load %arg3[%c0_6, %c0_7] : memref<1x512xf32, #tpu.memory_space<vmem>>, vector<1x512xf32>
    %13 = vector.broadcast %12 : vector<1x512xf32> to vector<16x512xf32>
    %14 = arith.mulf %11, %13 : vector<16x512xf32>
    %c0_8 = arith.constant 0 : index
    %c0_9 = arith.constant 0 : index
    %15 = vector.load %arg4[%c0_8, %c0_9] : memref<1x512xf32, #tpu.memory_space<vmem>>, vector<1x512xf32>
    %16 = vector.broadcast %15 : vector<1x512xf32> to vector<16x512xf32>
    %17 = arith.addf %14, %16 : vector<16x512xf32>
    %cst_10 = arith.constant 0.000000e+00 : f32
    %18 = vector.broadcast %cst_10 : f32 to vector<16x512xf32>
    %19 = arith.maximumf %17, %18 : vector<16x512xf32>
    %20 = vector.extract_strided_slice %19 {offsets = [0, 0], sizes = [16, 480], strides = [1, 1]} : vector<16x512xf32> to vector<16x480xf32>
    %21 = vector.extract_strided_slice %19 {offsets = [0, 32], sizes = [16, 480], strides = [1, 1]} : vector<16x512xf32> to vector<16x480xf32>
    %22 = arith.addf %20, %21 : vector<16x480xf32>
    %23 = vector.extract_strided_slice %22 {offsets = [0, 0], sizes = [15, 480], strides = [1, 1]} : vector<16x480xf32> to vector<15x480xf32>
    %24 = vector.extract_strided_slice %22 {offsets = [1, 0], sizes = [15, 480], strides = [1, 1]} : vector<16x480xf32> to vector<15x480xf32>
    %25 = arith.addf %23, %24 : vector<15x480xf32>
    %cst_11 = arith.constant 2.500000e-01 : f32
    %26 = vector.broadcast %cst_11 : f32 to vector<15x480xf32>
    %27 = arith.mulf %25, %26 : vector<15x480xf32>
    %28 = arith.truncf %27 : vector<15x480xf32> to vector<15x480xbf16>
    %c0_12 = arith.constant 0 : index
    %c0_13 = arith.constant 0 : index
    %c0_14 = arith.constant 0 : index
    %29 = vector.load %arg5[%c0_12, %c0_13, %c0_14] : memref<2x15x480xbf16, #tpu.memory_space<vmem>>, vector<1x15x480xbf16>
    %30 = vector.shape_cast %29 : vector<1x15x480xbf16> to vector<15x480xbf16>
    %31 = vector.shape_cast %28 : vector<15x480xbf16> to vector<1x15x480xbf16>
    tpu.vector_store %arg5[%c0_12, %c0_13, %c0_14], %31 {strides = array<i32>} : memref<2x15x480xbf16, #tpu.memory_space<vmem>>, vector<1x15x480xbf16>,
    %c1 = arith.constant 1 : index
    %c0_15 = arith.constant 0 : index
    %c0_16 = arith.constant 0 : index
    %32 = vector.load %arg1[%c1, %c0_15, %c0_16] : memref<2x16x64xbf16, #tpu.memory_space<vmem>>, vector<1x16x64xbf16>
    %33 = vector.shape_cast %32 : vector<1x16x64xbf16> to vector<16x64xbf16>
    %34 = tpu.concatenate %0, %33, %0 in 1 : vector<16x4xbf16>, vector<16x64xbf16>, vector<16x4xbf16> -> vector<16x72xbf16>
    %35 = vector.extract_strided_slice %34 {offsets = [0, 0], sizes = [15, 72], strides = [1, 1]} : vector<16x72xbf16> to vector<15x72xbf16>
    %36 = tpu.concatenate %1, %35 in 0 : vector<1x72xbf16>, vector<15x72xbf16> -> vector<16x72xbf16>
    %37 = vector.extract_strided_slice %34 {offsets = [1, 0], sizes = [15, 72], strides = [1, 1]} : vector<16x72xbf16> to vector<15x72xbf16>
    %38 = tpu.concatenate %37, %1 in 0 : vector<15x72xbf16>, vector<1x72xbf16> -> vector<16x72xbf16>
    %39 = tpu.concatenate %36, %34, %38 in 1 : vector<16x72xbf16>, vector<16x72xbf16>, vector<16x72xbf16> -> vector<16x216xbf16>
    %c0_17 = arith.constant 0 : index
    %c0_18 = arith.constant 0 : index
    %40 = vector.load %arg2[%c0_17, %c0_18] : memref<216x512xbf16, #tpu.memory_space<vmem>>, vector<216x512xbf16>
    %cst_19 = arith.constant dense<0.000000e+00> : vector<16x512xf32>
    %41 = tpu.matmul %39, %40, %cst_19 {dimension_numbers = #tpu.dot_dimension_numbers<[1], [0], [0], [1], [0, 0, 1, 1], [], []>} : vector<16x216xbf16>, vector<216x512xbf16>, vector<16x512xf32> -> vector<16x512xf32>
    %c0_20 = arith.constant 0 : index
    %c0_21 = arith.constant 0 : index
    %42 = vector.load %arg3[%c0_20, %c0_21] : memref<1x512xf32, #tpu.memory_space<vmem>>, vector<1x512xf32>
    %43 = vector.broadcast %42 : vector<1x512xf32> to vector<16x512xf32>
    %44 = arith.mulf %41, %43 : vector<16x512xf32>
    %c0_22 = arith.constant 0 : index
    %c0_23 = arith.constant 0 : index
    %45 = vector.load %arg4[%c0_22, %c0_23] : memref<1x512xf32, #tpu.memory_space<vmem>>, vector<1x512xf32>
    %46 = vector.broadcast %45 : vector<1x512xf32> to vector<16x512xf32>
    %47 = arith.addf %44, %46 : vector<16x512xf32>
    %cst_24 = arith.constant 0.000000e+00 : f32
    %48 = vector.broadcast %cst_24 : f32 to vector<16x512xf32>
    %49 = arith.maximumf %47, %48 : vector<16x512xf32>
    %50 = vector.extract_strided_slice %49 {offsets = [0, 0], sizes = [16, 480], strides = [1, 1]} : vector<16x512xf32> to vector<16x480xf32>
    %51 = vector.extract_strided_slice %49 {offsets = [0, 32], sizes = [16, 480], strides = [1, 1]} : vector<16x512xf32> to vector<16x480xf32>
    %52 = arith.addf %50, %51 : vector<16x480xf32>
    %53 = vector.extract_strided_slice %52 {offsets = [0, 0], sizes = [15, 480], strides = [1, 1]} : vector<16x480xf32> to vector<15x480xf32>
    %54 = vector.extract_strided_slice %52 {offsets = [1, 0], sizes = [15, 480], strides = [1, 1]} : vector<16x480xf32> to vector<15x480xf32>
    %55 = arith.addf %53, %54 : vector<15x480xf32>
    %cst_25 = arith.constant 2.500000e-01 : f32
    %56 = vector.broadcast %cst_25 : f32 to vector<15x480xf32>
    %57 = arith.mulf %55, %56 : vector<15x480xf32>
    %58 = arith.truncf %57 : vector<15x480xf32> to vector<15x480xbf16>
    %c1_26 = arith.constant 1 : index
    %c0_27 = arith.constant 0 : index
    %c0_28 = arith.constant 0 : index
    %59 = vector.load %arg5[%c1_26, %c0_27, %c0_28] : memref<2x15x480xbf16, #tpu.memory_space<vmem>>, vector<1x15x480xbf16>
    %60 = vector.shape_cast %59 : vector<1x15x480xbf16> to vector<15x480xbf16>
    %61 = vector.shape_cast %58 : vector<15x480xbf16> to vector<1x15x480xbf16>
    tpu.vector_store %arg5[%c1_26, %c0_27, %c0_28], %61 {strides = array<i32>} : memref<2x15x480xbf16, #tpu.memory_space<vmem>>, vector<1x15x480xbf16>,
    return
  }
  func.func @transform_0(%arg0: i32) -> (i32, i32, i32) {
    %c0_i32 = arith.constant 0 : i32
    %c0_i32_0 = arith.constant 0 : i32
    %c0_i32_1 = arith.constant 0 : i32
    return %arg0, %c0_i32, %c0_i32_0 : i32, i32, i32
  }
  func.func @transform_1(%arg0: i32) -> (i32, i32) {
    %c0_i32 = arith.constant 0 : i32
    %c0_i32_0 = arith.constant 0 : i32
    %c0_i32_1 = arith.constant 0 : i32
    return %c0_i32, %c0_i32_0 : i32, i32
  }
  func.func @transform_2(%arg0: i32) -> (i32, i32) {
    %c0_i32 = arith.constant 0 : i32
    %c0_i32_0 = arith.constant 0 : i32
    %c0_i32_1 = arith.constant 0 : i32
    return %c0_i32, %c0_i32_0 : i32, i32
  }
  func.func @transform_3(%arg0: i32) -> (i32, i32) {
    %c0_i32 = arith.constant 0 : i32
    %c0_i32_0 = arith.constant 0 : i32
    %c0_i32_1 = arith.constant 0 : i32
    return %c0_i32, %c0_i32_0 : i32, i32
  }
  func.func @transform_4(%arg0: i32) -> (i32, i32, i32) {
    %c0_i32 = arith.constant 0 : i32
    %c0_i32_0 = arith.constant 0 : i32
    %c0_i32_1 = arith.constant 0 : i32
    return %arg0, %c0_i32, %c0_i32_0 : i32, i32, i32
  }
}

</mosaic_0001>

<bundles_post_ra>
// kernel: tpu_custom_call.1
= control target key start
LH: loop header
LB: loop body
LE: loop exit
PB: predicated region body
PF: predicated region fallthrough
CT: control target
= control target key end

     0   :  { %9 = vsyncpa [#allocation3], 0  ;;  %s2433_s0 = inlined_call_operand.hbm [shape: bf16[2,16,64], index: 0, kind: input, shape index: {}]   ;;  %s2434_s1 = inlined_call_operand.hbm [shape: bf16[216,512], index: 1, kind: input, shape index: {}]   ;;  %s2435_s2 = inlined_call_operand.hbm [shape: f32[1,512], index: 2, kind: input, shape index: {}]   ;;  %s2436_s3 = inlined_call_operand.hbm [shape: f32[1,512], index: 3, kind: input, shape index: {}]   ;;  %s2437_s4 = inlined_call_operand.vmem [shape: bf16[2,15,480], index: 4, kind: output, shape index: {}]  }
   0x1   :  { %10 = vsyncpa [#allocation5], 0  ;;  %s29_s17 = sshll.u32 %s2434_s1, 4  ;;  %s30_s17 = int_to_ptr.hbm [resolvable:$true] %s29_s17 }
   0x2   :  { %11 = vsyncpa [#allocation8], 0  ;;  %s2032_s18 = smov [#allocation4]   ;;  %s16_s22 = sshll.u32 %s2433_s0, 4  ;;  %s17_s22 = int_to_ptr.hbm [resolvable:$true] %s16_s22 }
   0x3   :  { %s31_s19 = sshll.u32 %s2032_s18, 4  ;;  %s2033_s23 = smov 256   ;;  %s32_s19 = int_to_ptr.vmem [resolvable:$true] %s31_s19 }
   0x4   :  { %s2034_s24 = smov 16   ;;  %s2035_s25 = smov [#allocation2]  }
   0x5   :  { %37 = dma.hbm_to_vmem [thread:$0]  %s30_s17, 6912, %s32_s19, [#allocation5], %s2033_s23, %s2033_s23, %s2034_s24  }
   0x6   :  { %s18_s26 = sshll.u32 %s2035_s25, 4  ;;  %s2036_s27 = smov 64   ;;  %s19_s26 = int_to_ptr.vmem [resolvable:$true] %s18_s26 }
   0x7   :  { %s2037_s28 = smov 4   ;;  %s43_s30 = sshll.u32 %s2435_s2, 4  ;;  %s44_s30 = int_to_ptr.hbm [resolvable:$true] %s43_s30 }
   0x8   :  { %24 = dma.hbm_to_vmem [thread:$0]  %s17_s22, 256, %s19_s26, [#allocation3], %s2036_s27, %s2036_s27, %s2037_s28  }
   0x9   :  { %s2038_s5 = smov [#allocation6]   ;;  %s54_s8 = sshll.u32 %s2436_s3, 4  ;;  %s55_s8 = int_to_ptr.hbm [resolvable:$true] %s54_s8 }
   0xa   :  { %s45_s6 = sshll.u32 %s2038_s5, 4  ;;  %s2039_s9 = smov [#allocation7]   ;;  %s46_s6 = int_to_ptr.vmem [resolvable:$true] %s45_s6 }
   0xb   :  { %48 = dma.hbm_to_vmem [thread:$0]  %s44_s30, 64, %s46_s6, [#allocation5]  }
   0xc   :  { %s56_s10 = sshll.u32 %s2039_s9, 4  ;;  %s57_s10 = int_to_ptr.vmem [resolvable:$true] %s56_s10 }
   0xd   :  { %59 = dma.hbm_to_vmem [thread:$0]  %s55_s8, 64, %s57_s10, [#allocation8]  }
   0xe   :  { %2026 = dma.done.wait [#allocation3], 256  }
   0xf   :  { %2027 = vsyncadd [#allocation3], 4294967040 }
  0x10   :  { %2028 = dma.done.wait [#allocation5], 6976  }
  0x11   :  { %2029 = vsyncadd [#allocation5], 4294960320 }
  0x12   :  { %2030 = dma.done.wait [#allocation8], 64  }
  0x13   :  { %2031 = vsyncadd [#allocation8], 4294967232  ;;  %v1814_v0 = vld [vmem:[#allocation2] sm:$0xff]  ;;  %v1867_v1 = vld [vmem:[#allocation2 + $0x8] sm:$0xff]  ;;  %vm451_vm0 = vcmask 1043456   ;;  %vm86_vm1 = vcmask 31744  }
  0x14   :  { %84 = vrot.lane.b32.xlu0 %v1814_v0, %s2037_s28  ;;  %v1494_v2 = vld [vmem:[#allocation4 + $0xe0] sm:$0xf]  ;;  %v1845_v3 = vld [vmem:[#allocation4 + $0xec] sm:$0xf0]  ;;  %v1843_v10 = vld [vmem:[#allocation4 + $0xe4] sm:$0xf] }
  0x15   :  { %v1495_v4 = vor.u32 %v1845_v3, %v1494_v2  ;;  %v1478_v5 = vld [vmem:[#allocation4 + $0xc0] sm:$0xf]  ;;  %v1841_v6 = vld [vmem:[#allocation4 + $0xcc] sm:$0xf0]  ;;  %v1496_v11 = vld [vmem:[#allocation4 + $0xf0] sm:$0xf0] }
  0x16   :  { %v1479_v7 = vor.u32 %v1841_v6, %v1478_v5  ;;  %v1462_v8 = vld [vmem:[#allocation4 + $0xa0] sm:$0xf]  ;;  %v1837_v9 = vld [vmem:[#allocation4 + $0xac] sm:$0xf0]  ;;  %v1499_v12 = vor.u32 %v1843_v10, %v1496_v11  ;;  %v1839_v13 = vld [vmem:[#allocation4 + $0xc4] sm:$0xf] }
  0x17   :  { %464 = vmatpush.bf16.msra.mxu0 %v1495_v4  ;;  %v1463_v14 = vor.u32 %v1837_v9, %v1462_v8  ;;  %v1480_v15 = vld [vmem:[#allocation4 + $0xd0] sm:$0xf0]  ;;  %v1446_v16 = vld [vmem:[#allocation4 + $0x80] sm:$0xf]  ;;  %v1833_v17 = vld [vmem:[#allocation4 + $0x8c] sm:$0xf0] }
  0x18   :  { %492 = vmatpush.bf16.msra.mxu2 %v1499_v12  ;;  %v1483_v18 = vor.u32 %v1839_v13, %v1480_v15  ;;  %v176_v19 = vld [vmem:[#allocation4 + $0x1a0] sm:$0xff]  ;;  %v1464_v22 = vld [vmem:[#allocation4 + $0xb0] sm:$0xf0]  ;;  %v1447_v24 = vor.u32 %v1833_v17, %v1446_v16  ;;  %v1865_v27 = vld [vmem:[#allocation4 + $0x18c] sm:$0xf0]  ;;  %vm90_vm2 = vcmask 556032  }
  0x19   :  { %v336_v20 = vunpack.c.l.b16 %v176_v19  ;;  %v1835_v21 = vld [vmem:[#allocation4 + $0xa4] sm:$0xf]  ;;  %v337_v23 = vunpack.c.h.b16 %v176_v19  ;;  %v1574_v26 = vld [vmem:[#allocation4 + $0x180] sm:$0xf]  ;;  %v1829_v30 = vld [vmem:[#allocation4 + $0x6c] sm:$0xf0] }
  0x1a   :  { %v1430_v29 = vld [vmem:[#allocation4 + $0x60] sm:$0xf]  ;;  %v1467_v31 = vor.u32 %v1835_v21, %v1464_v22  ;;  %v1831_v33 = vld [vmem:[#allocation4 + $0x84] sm:$0xf]  ;;  %v1448_v34 = vld [vmem:[#allocation4 + $0x90] sm:$0xf0]  ;;  %v1575_v36 = vor.u32 %v1865_v27, %v1574_v26 }
  0x1b   :  { %465 = vmatpush.bf16.msra.mxu0 %v1479_v7  ;;  %v392_v25 = vpack.c.b16 %v336_v20, %v336_v20  ;;  %v393_v28 = vpack.c.b16 %v337_v23, %v337_v23  ;;  %v1558_v37 = vld [vmem:[#allocation4 + $0x160] sm:$0xf]  ;;  %v1431_v38 = vor.u32 %v1829_v30, %v1430_v29  ;;  %v1861_v39 = vld [vmem:[#allocation4 + $0x16c] sm:$0xf0]  ;;  %v1863_v40 = vld [vmem:[#allocation4 + $0x184] sm:$0xf]  ;;  %v1451_v45 = vor.u32 %v1831_v33, %v1448_v34 }
  0x1c   :  { %743 = vrot.lane.b32.xlu0 %v1867_v1, %s2037_s28  ;;  %493 = vmatpush.bf16.msra.mxu2 %v1483_v18  ;;  %v1576_v41 = vld [vmem:[#allocation4 + $0x190] sm:$0xf0]  ;;  %vm107_vm3 = vsmask.f32 7424  ;;  %v1414_v43 = vld [vmem:[#allocation4 + $0x40] sm:$0xf]  ;;  %v1559_v51 = vor.u32 %v1861_v39, %v1558_v37 }
  0x1d   :  { %v2081_v32 = vsel %vm451_vm0, %v392_v25, 0  ;;  %v2084_v35 = vsel %vm451_vm0, %v393_v28, 0  ;;  %v1825_v44 = vld [vmem:[#allocation4 + $0x4c] sm:$0xf0]  ;;  %v1579_v46 = vor.u32 %v1863_v40, %v1576_v41  ;;  %v1827_v48 = vld [vmem:[#allocation4 + $0x64] sm:$0xf] }
  0x1e   :  { %480 = vmatpush.bf16.msra.mxu1 %v2081_v32  ;;  %508 = vmatpush.bf16.msra.mxu3 %v2084_v35  ;;  %v1432_v49 = vld [vmem:[#allocation4 + $0x70] sm:$0xf0]  ;;  %vm106_vm4 = vcmask 1047552   ;;  %v1542_v52 = vld [vmem:[#allocation4 + $0x140] sm:$0xf]  ;;  %s2040_s2 = smov 72   ;;  %v1415_v56 = vor.u32 %v1825_v44, %v1414_v43 }
  0x1f   :  { %466 = vmatpush.bf16.msra.mxu0 %v1463_v14  ;;  %v1859_v53 = vld [vmem:[#allocation4 + $0x164] sm:$0xf]  ;;  %v1857_v57 = vld [vmem:[#allocation4 + $0x14c] sm:$0xf0]  ;;  %v1560_v58 = vld [vmem:[#allocation4 + $0x170] sm:$0xf0]  ;;  %v1435_v61 = vor.u32 %v1827_v48, %v1432_v49 }
  0x20   :  { %494 = vmatpush.bf16.msra.mxu2 %v1467_v31  ;;  %v1398_v59 = vld [vmem:[#allocation4 + $0x20] sm:$0xf]  ;;  %v1821_v60 = vld [vmem:[#allocation4 + $0x2c] sm:$0xf0]  ;;  %v1563_v62 = vor.u32 %v1859_v53, %v1560_v58  ;;  %v1823_v1 = vld [vmem:[#allocation4 + $0x44] sm:$0xf]  ;;  %v1543_v4 = vor.u32 %v1857_v57, %v1542_v52 }
  0x21   :  { %v1416_v2 = vld [vmem:[#allocation4 + $0x50] sm:$0xf0]  ;;  %vm2093_vm5 = vmand %vm106_vm4, %vm107_vm3  ;;  %v1855_v5 = vld [vmem:[#allocation4 + $0x144] sm:$0xf]  ;;  %v1399_v15 = vor.u32 %v1821_v60, %v1398_v59  ;;  %vm99_vm6 = vcmask 1040384   ;;  %vm116_vm9 = vcmask 588800  }
  0x22   :  { %481 = vmatpush.bf16.msra.mxu1 %v1575_v36  ;;  %509 = vmatpush.bf16.msra.mxu3 %v1579_v46  ;;  %v1544_v6 = vld [vmem:[#allocation4 + $0x150] sm:$0xf0]  ;;  %v1382_v9 = vld [vmem:[#allocation4] sm:$0xf]  ;;  %v1853_v11 = vld [vmem:[#allocation4 + $0x12c] sm:$0xf0]  ;;  %v1419_v17 = vor.u32 %v1823_v1, %v1416_v2 }
  0x23   :  { %467 = vmatpush.bf16.msra.mxu0 %v1447_v24  ;;  %v1526_v10 = vld [vmem:[#allocation4 + $0x120] sm:$0xf]  ;;  %v1547_v12 = vor.u32 %v1855_v5, %v1544_v6  ;;  %v2099_v13 = vld [vmem:[#allocation4 + $0x1a8] sm:$0xff]  ;;  %v1817_v16 = vld [vmem:[#allocation4 + $0xc] sm:$0xf0]  ;;  %vm121_vm10 = vcmask 130048  }
  0x24   :  { %495 = vmatpush.bf16.msra.mxu2 %v1451_v45  ;;  %v1851_v18 = vld [vmem:[#allocation4 + $0x124] sm:$0xf]  ;;  %v1528_v19 = vld [vmem:[#allocation4 + $0x130] sm:$0xf0]  ;;  %v1844_v25 = vld [vmem:[#allocation4 + $0xec] sm:$0xf]  ;;  %v1527_v27 = vor.u32 %v1853_v11, %v1526_v10  ;;  %v339_v28 = vunpack.c.h.b16 %v2099_v13  ;;  %v1383_v36 = vor.u32 %v1817_v16, %v1382_v9 }
  0x25   :  { %v1819_v22 = vld [vmem:[#allocation4 + $0x24] sm:$0xf]  ;;  %v1400_v23 = vld [vmem:[#allocation4 + $0x30] sm:$0xf0]  ;;  %v1504_v26 = vld [vmem:[#allocation4 + $0xf8] sm:$0xf0]  ;;  %v1531_v29 = vor.u32 %v1851_v18, %v1528_v19 }
  0x26   :  { %482 = vmatpush.bf16.msra.mxu1 %v1559_v51  ;;  %510 = vmatpush.bf16.msra.mxu3 %v1563_v62  ;;  %v1510_v33 = vld [vmem:[#allocation4 + $0x100] sm:$0xf]  ;;  %v1849_v34 = vld [vmem:[#allocation4 + $0x10c] sm:$0xf0]  ;;  %v1403_v37 = vor.u32 %v1819_v22, %v1400_v23  ;;  %v1846_v39 = vld [vmem:[#allocation4 + $0xf4] sm:$0xf0]  ;;  %v395_v48 = vpack.c.b16 %v339_v28, %v339_v28 }
  0x27   :  { %468 = vmatpush.bf16.msra.mxu0 %v1431_v38  ;;  %v1502_v38 = vld [vmem:[#allocation4 + $0xe8] sm:$0xf]  ;;  %v1815_v43 = vld [vmem:[#allocation4 + $0x4] sm:$0xf]  ;;  %v1384_v44 = vld [vmem:[#allocation4 + $0x10] sm:$0xf0] }
  0x28   :  { %496 = vmatpush.bf16.msra.mxu2 %v1435_v61  ;;  %v1840_v45 = vld [vmem:[#allocation4 + $0xcc] sm:$0xf]  ;;  %v1488_v46 = vld [vmem:[#allocation4 + $0xd8] sm:$0xf0]  ;;  %v1503_v51 = vor.u32 %v1846_v39, %v1502_v38  ;;  %v1387_v52 = vor.u32 %v1815_v43, %v1384_v44  ;;  %v2113_v57 = vsel %vm451_vm0, %v395_v48, 0  ;;  %vm448_vm11 = vcmask 719872  }
  0x29   :  { %v1486_v59 = vld [vmem:[#allocation4 + $0xc8] sm:$0xf]  ;;  %v1842_v60 = vld [vmem:[#allocation4 + $0xd4] sm:$0xf0]  ;;  %v1832_v61 = vld [vmem:[#allocation4 + $0x8c] sm:$0xf] }
  0x2a   :  { %483 = vmatpush.bf16.msra.mxu1 %v1543_v4  ;;  %511 = vmatpush.bf16.msra.mxu3 %v1547_v12  ;;  %v1487_v62 = vor.u32 %v1842_v60, %v1486_v59  ;;  %v1584_v1 = vld [vmem:[#allocation4 + $0x198] sm:$0xf0]  ;;  %v338_v4 = vunpack.c.l.b16 %v2099_v13  ;;  %v1847_v5 = vld [vmem:[#allocation4 + $0x104] sm:$0xf]  ;;  %v1512_v6 = vld [vmem:[#allocation4 + $0x110] sm:$0xf0] }
  0x2b   :  { %469 = vmatpush.bf16.msra.mxu0 %v1415_v56  ;;  %v1472_v56 = vld [vmem:[#allocation4 + $0xb8] sm:$0xf0]  ;;  %v1515_v9 = vor.u32 %v1847_v5, %v1512_v6  ;;  %v1838_v10 = vld [vmem:[#allocation4 + $0xb4] sm:$0xf0]  ;;  %v1828_v12 = vld [vmem:[#allocation4 + $0x6c] sm:$0xf] }
  0x2c   :  { %497 = vmatpush.bf16.msra.mxu2 %v1419_v17  ;;  %v394_v11 = vpack.c.b16 %v338_v4, %v338_v4  ;;  %v1860_v17 = vld [vmem:[#allocation4 + $0x16c] sm:$0xf]  ;;  %v1568_v18 = vld [vmem:[#allocation4 + $0x178] sm:$0xf0]  ;;  %v1454_v19 = vld [vmem:[#allocation4 + $0x88] sm:$0xf] }
  0x2d   :  { %v1571_v13 = vor.u32 %v1860_v17, %v1568_v18  ;;  %v1582_v22 = vld [vmem:[#allocation4 + $0x188] sm:$0xf]  ;;  %v1820_v38 = vld [vmem:[#allocation4 + $0x2c] sm:$0xf]  ;;  %v1408_v39 = vld [vmem:[#allocation4 + $0x38] sm:$0xf0] }
  0x2e   :  { %484 = vmatpush.bf16.msra.mxu1 %v1527_v27  ;;  %512 = vmatpush.bf16.msra.mxu3 %v1531_v29  ;;  %v1856_v29 = vld [vmem:[#allocation4 + $0x14c] sm:$0xf]  ;;  %v1536_v43 = vld [vmem:[#allocation4 + $0x138] sm:$0xf0]  ;;  %v1411_v44 = vor.u32 %v1820_v38, %v1408_v39  ;;  %v1550_v48 = vld [vmem:[#allocation4 + $0x148] sm:$0xf] }
  0x2f   :  { %470 = vmatpush.bf16.msra.mxu0 %v1399_v15  ;;  %v1406_v60 = vld [vmem:[#allocation4 + $0x28] sm:$0xf]  ;;  %v1850_v6 = vld [vmem:[#allocation4 + $0x114] sm:$0xf0]  ;;  %vm100_vm7 = vsmask.f32 256 }
  0x30   :  { %498 = vmatpush.bf16.msra.mxu2 %v1403_v37  ;;  %v1862_v37 = vld [vmem:[#allocation4 + $0x174] sm:$0xf0]  ;;  %v1518_v5 = vld [vmem:[#allocation4 + $0x108] sm:$0xf]  ;;  %vm2122_vm8 = vmand %vm99_vm6, %vm100_vm7  ;;  %s2041_s3 = smov 96   ;;  %vm644_vm12 = vcmask 785408  }
  0x31   :  { %v1696_v17 = vld [vmem:[#allocation4 + $0xd0] sm:$0xf0]  ;;  %v1916_v18 = vld [vmem:[#allocation4 + $0x184] sm:$0xf]  ;;  %vm675_vm13 = vcmask 1046528   ;;  %vm717_vm15 = vcmask 785412  }
  0x32   :  { %513 = vmatpush.bf16.msra.mxu3 %v1515_v9  ;;  %v1664_v39 = vld [vmem:[#allocation4 + $0x90] sm:$0xf0]  ;;  %v1913_v9 = vld [vmem:[#allocation4 + $0x16c] sm:$0xf]  ;;  %vm721_vm14 = vsmask.f32 3328  ;;  %vm2349_vm7 = vmor %vm717_vm15, %vm451_vm0 }
  0x33   :  { %471 = vmatpush.bf16.msra.mxu0 %v1383_v36  ;;  %v1566_v36 = vld [vmem:[#allocation4 + $0x168] sm:$0xf] }
  0x34   :  { %499 = vmatpush.bf16.msra.mxu2 %v1387_v52  ;;  %v1816_v52 = vld [vmem:[#allocation4 + $0xc] sm:$0xf] }
  0x38   :  { %564 = vmatpush.bf16.msrb.mxu2 %v2113_v57 }
  0x86   :  { %v85_v42 = vpop.permute.xlu0 %84 }
  0x87   :  { %v89_v47 = vsel %vm86_vm1, 0, %v85_v42  ;;  %v1507_v42 = vor.u32 %v1844_v25, %v1504_v26  ;;  %v1824_v25 = vld [vmem:[#allocation4 + $0x4c] sm:$0xf]  ;;  %v1424_v26 = vld [vmem:[#allocation4 + $0x58] sm:$0xf0] }
  0x88   :  { %v91_v50 = vsel %vm90_vm2, %v89_v47, 0  ;;  %v1511_v47 = vor.u32 %v1849_v34, %v1510_v33  ;;  %v1427_v28 = vor.u32 %v1824_v25, %v1424_v26  ;;  %v1830_v34 = vld [vmem:[#allocation4 + $0x74] sm:$0xf0]  ;;  %v1680_v25 = vld [vmem:[#allocation4 + $0xb0] sm:$0xf0] }
  0x89   :  { %v92_v54 = vshrl.u32 %v91_v50, 16  ;;  %v95_v55 = vshll.u32 %v91_v50, 16  ;;  %111 = vrot.lane.b32.xlu1 %v91_v50, %s2040_s2  ;;  %548 = vmatpush.bf16.msrb.mxu0 %v1507_v42  ;;  %v1567_v42 = vor.u32 %v1862_v37, %v1566_v36  ;;  %v1912_v26 = vld [vmem:[#allocation4 + $0x164] sm:$0xf]  ;;  %v1790_v36 = vld [vmem:[#allocation4 + $0x180] sm:$0xf] }
  0x8a   :  { %485 = vmatpush.bf16.msra.mxu1 %v1511_v47  ;;  %v1826_v47 = vld [vmem:[#allocation4 + $0x54] sm:$0xf0]  ;;  %v1884_v37 = vld [vmem:[#allocation4 + $0x84] sm:$0xf] }
  0x8b   :  { %v94_v63 = vrot.slane %v92_v54, 7  ;;  %v103_v0 = vrot.slane %v95_v55, 1 }
  0x8d   :  { %v2097_v7 = vor.u32 %v95_v55, %v94_v63  ;;  %v104_v8 = vor.u32 %v103_v0, %v92_v54  ;;  %v1491_v54 = vor.u32 %v1840_v45, %v1488_v46  ;;  %v1836_v55 = vld [vmem:[#allocation4 + $0xac] sm:$0xf]  ;;  %v1456_v63 = vld [vmem:[#allocation4 + $0x98] sm:$0xf0]  ;;  %v1422_v46 = vld [vmem:[#allocation4 + $0x48] sm:$0xf] }
  0x8e   :  { %v744_v14 = vpop.permute.xlu0 %743  ;;  %520 = vmatpush.bf16.msrb.mxu1 %v1503_v51  ;;  %v1475_v58 = vor.u32 %v1836_v55, %v1472_v56  ;;  %v1864_v0 = vld [vmem:[#allocation4 + $0x18c] sm:$0xf]  ;;  %v1459_v2 = vor.u32 %v1832_v61, %v1456_v63  ;;  %v1858_v51 = vld [vmem:[#allocation4 + $0x154] sm:$0xf0] }
  0x8f   :  { %v746_v20 = vsel %vm86_vm1, 0, %v744_v14  ;;  %v109_v21 = vsel %vm2093_vm5, %v104_v8, 0  ;;  %549 = vmatpush.bf16.msrb.mxu0 %v1491_v54  ;;  %v1587_v3 = vor.u32 %v1864_v0, %v1584_v1  ;;  %v1470_v8 = vld [vmem:[#allocation4 + $0xa8] sm:$0xf]  ;;  %v1440_v14 = vld [vmem:[#allocation4 + $0x78] sm:$0xf0]  ;;  %v1551_v54 = vor.u32 %v1858_v51, %v1550_v48 }
  0x90   :  { %v747_v24 = vsel %vm90_vm2, %v746_v20, 0  ;;  %v1471_v15 = vor.u32 %v1838_v10, %v1470_v8  ;;  %v1443_v16 = vor.u32 %v1828_v12, %v1440_v14  ;;  %v2119_v20 = vsel %vm451_vm0, %v394_v11, 0  ;;  %v1848_v56 = vld [vmem:[#allocation4 + $0x10c] sm:$0xf]  ;;  %v1822_v61 = vld [vmem:[#allocation4 + $0x34] sm:$0xf0]  ;;  %vm2316_vm2 = vmand %vm451_vm0, %vm721_vm14 }
  0x91   :  { %v748_v30 = vshrl.u32 %v747_v24, 16  ;;  %v751_v31 = vshll.u32 %v747_v24, 16  ;;  %114 = vrot.lane.b32.xlu1 %v109_v21, %s2034_s24  ;;  %761 = vrot.lane.b32.xlu2 %v747_v24, %s2040_s2  ;;  %v1834_v21 = vld [vmem:[#allocation4 + $0x94] sm:$0xf0]  ;;  %v1407_v63 = vor.u32 %v1822_v61, %v1406_v60  ;;  %v1519_v8 = vor.u32 %v1850_v6, %v1518_v5  ;;  %v1896_v10 = vld [vmem:[#allocation4 + $0xe4] sm:$0xf] }
  0x92   :  { %521 = vmatpush.bf16.msrb.mxu1 %v1487_v62  ;;  %565 = vmatpush.bf16.msrb.mxu2 %v1587_v3  ;;  %v1455_v23 = vor.u32 %v1834_v21, %v1454_v19  ;;  %v1866_v24 = vld [vmem:[#allocation4 + $0x194] sm:$0xf0]  ;;  %v1534_v62 = vld [vmem:[#allocation4 + $0x128] sm:$0xf]  ;;  %v1712_v11 = vld [vmem:[#allocation4 + $0xf0] sm:$0xf0] }
  0x93   :  { %v750_v40 = vrot.slane %v748_v30, 7  ;;  %v756_v41 = vrot.slane %v751_v31, 1  ;;  %550 = vmatpush.bf16.msrb.mxu0 %v1475_v58  ;;  %536 = vmatpush.bf16.msrb.mxu3 %v2119_v20  ;;  %v1583_v27 = vor.u32 %v1866_v24, %v1582_v22  ;;  %v1520_v58 = vld [vmem:[#allocation4 + $0x118] sm:$0xf0]  ;;  %v1854_v0 = vld [vmem:[#allocation4 + $0x134] sm:$0xf0]  ;;  %v1715_v14 = vor.u32 %v1896_v10, %v1712_v11 }
  0x94   :  { %v1523_v59 = vor.u32 %v1848_v56, %v1520_v58  ;;  %v1535_v1 = vor.u32 %v1854_v0, %v1534_v62  ;;  %v1818_v3 = vld [vmem:[#allocation4 + $0x14] sm:$0xf0]  ;;  %v102_v12 = vsel %vm2122_vm8, 0, %v2097_v7  ;;  %v1792_v19 = vld [vmem:[#allocation4 + $0x190] sm:$0xf0]  ;;  %vm723_vm1 = vcmask 1047556  }
  0x95   :  { %v2108_v49 = vor.u32 %v751_v31, %v750_v40  ;;  %v757_v50 = vor.u32 %v756_v41, %v748_v30  ;;  %v1552_v30 = vld [vmem:[#allocation4 + $0x158] sm:$0xf0]  ;;  %v1438_v31 = vld [vmem:[#allocation4 + $0x68] sm:$0xf]  ;;  %v1852_v40 = vld [vmem:[#allocation4 + $0x12c] sm:$0xf]  ;;  %v1795_v22 = vor.u32 %v1916_v18, %v1792_v19 }
  0x96   :  { %522 = vmatpush.bf16.msrb.mxu1 %v1471_v15  ;;  %566 = vmatpush.bf16.msrb.mxu2 %v1571_v13  ;;  %v1555_v33 = vor.u32 %v1856_v29, %v1552_v30  ;;  %v1439_v41 = vor.u32 %v1830_v34, %v1438_v31  ;;  %v1539_v45 = vor.u32 %v1852_v40, %v1536_v43  ;;  %v1892_v15 = vld [vmem:[#allocation4 + $0xc4] sm:$0xf]  ;;  %v1898_v7 = vld [vmem:[#allocation4 + $0xec] sm:$0xf0]  ;;  %v1694_v29 = vld [vmem:[#allocation4 + $0xc0] sm:$0xf] }
  0x97   :  { %v759_v53 = vsel %vm2093_vm5, %v757_v50, 0  ;;  %551 = vmatpush.bf16.msrb.mxu0 %v1459_v2  ;;  %537 = vmatpush.bf16.msrb.mxu3 %v1583_v27  ;;  %v1423_v50 = vor.u32 %v1826_v47, %v1422_v46  ;;  %v1390_v2 = vld [vmem:[#allocation4 + $0x8] sm:$0xf]  ;;  %v1699_v21 = vor.u32 %v1892_v15, %v1696_v17  ;;  %v1888_v24 = vld [vmem:[#allocation4 + $0xa4] sm:$0xf]  ;;  %v1667_v46 = vor.u32 %v1884_v37, %v1664_v39  ;;  %vm2321_vm4 = vmand %vm723_vm1, %vm107_vm3 }
  0x98   :  { %v1391_v4 = vor.u32 %v1818_v3, %v1390_v2  ;;  %v1776_v27 = vld [vmem:[#allocation4 + $0x170] sm:$0xf0]  ;;  %v1894_v30 = vld [vmem:[#allocation4 + $0xcc] sm:$0xf0]  ;;  %v1908_v40 = vld [vmem:[#allocation4 + $0x144] sm:$0xf] }
  0x99   :  { %764 = vrot.lane.b32.xlu2 %v759_v53, %s2034_s24  ;;  %v1392_v53 = vld [vmem:[#allocation4 + $0x18] sm:$0xf0]  ;;  %v1779_v34 = vor.u32 %v1912_v26, %v1776_v27  ;;  %v1774_v48 = vld [vmem:[#allocation4 + $0x160] sm:$0xf]  ;;  %v1880_v51 = vld [vmem:[#allocation4 + $0x64] sm:$0xf] }
  0x9a   :  { %523 = vmatpush.bf16.msrb.mxu1 %v1455_v23  ;;  %567 = vmatpush.bf16.msrb.mxu2 %v1555_v33  ;;  %v1395_v55 = vor.u32 %v1816_v52, %v1392_v53  ;;  %v1710_v23 = vld [vmem:[#allocation4 + $0xe0] sm:$0xf]  ;;  %v1683_v33 = vor.u32 %v1888_v24, %v1680_v25  ;;  %v1648_v52 = vld [vmem:[#allocation4 + $0x70] sm:$0xf0]  ;;  %v1904_v53 = vld [vmem:[#allocation4 + $0x124] sm:$0xf] }
  0x9b   :  { %552 = vmatpush.bf16.msrb.mxu0 %v1443_v16  ;;  %538 = vmatpush.bf16.msrb.mxu3 %v1567_v42  ;;  %v1695_v42 = vor.u32 %v1894_v30, %v1694_v29  ;;  %v1662_v58 = vld [vmem:[#allocation4 + $0x80] sm:$0xf]  ;;  %v1910_v62 = vld [vmem:[#allocation4 + $0x14c] sm:$0xf0]  ;;  %v1632_v0 = vld [vmem:[#allocation4 + $0x50] sm:$0xf0] }
  0x9c   :  { %v1758_v61 = vld [vmem:[#allocation4 + $0x140] sm:$0xf]  ;;  %v1728_v2 = vld [vmem:[#allocation4 + $0x110] sm:$0xf0]  ;;  %v1897_v3 = vld [vmem:[#allocation4 + $0xec] sm:$0xf] }
  0x9d   :  { %v1759_v6 = vor.u32 %v1910_v62, %v1758_v61  ;;  %v1742_v15 = vld [vmem:[#allocation4 + $0x120] sm:$0xf]  ;;  %v1872_v18 = vld [vmem:[#allocation4 + $0x24] sm:$0xf]  ;;  %v1616_v19 = vld [vmem:[#allocation4 + $0x30] sm:$0xf0] }
  0x9e   :  { %524 = vmatpush.bf16.msrb.mxu1 %v1439_v41  ;;  %568 = vmatpush.bf16.msrb.mxu2 %v1539_v45  ;;  %v1760_v41 = vld [vmem:[#allocation4 + $0x150] sm:$0xf0]  ;;  %v1890_v45 = vld [vmem:[#allocation4 + $0xac] sm:$0xf0]  ;;  %v1630_v24 = vld [vmem:[#allocation4 + $0x40] sm:$0xf]  ;;  %v1619_v26 = vor.u32 %v1872_v18, %v1616_v19 }
  0x9f   :  { %553 = vmatpush.bf16.msrb.mxu0 %v1427_v28  ;;  %539 = vmatpush.bf16.msrb.mxu3 %v1551_v54  ;;  %v1711_v28 = vor.u32 %v1898_v7, %v1710_v23  ;;  %v1763_v47 = vor.u32 %v1908_v40, %v1760_v41  ;;  %v1744_v54 = vld [vmem:[#allocation4 + $0x130] sm:$0xf0]  ;;  %v1878_v25 = vld [vmem:[#allocation4 + $0x4c] sm:$0xf0]  ;;  %v1726_v27 = vld [vmem:[#allocation4 + $0x100] sm:$0xf] }
  0xa0   :  { %v1747_v60 = vor.u32 %v1904_v53, %v1744_v54  ;;  %v1868_v29 = vld [vmem:[#allocation4 + $0x4] sm:$0xf]  ;;  %v1631_v37 = vor.u32 %v1878_v25, %v1630_v24  ;;  %v755_v53 = vsel %vm2122_vm8, 0, %v2108_v49  ;;  %v1881_v61 = vld [vmem:[#allocation4 + $0x6c] sm:$0xf]  ;;  %vm2329_vm5 = vmand %vm717_vm15, %vm107_vm3 }
  0xa1   :  { %v1656_v49 = vld [vmem:[#allocation4 + $0x78] sm:$0xf0]  ;;  %v1905_v24 = vld [vmem:[#allocation4 + $0x12c] sm:$0xf]  ;;  %vm725_vm6 = vmor %vm2321_vm4, %vm2316_vm2 }
  0xa2   :  { %525 = vmatpush.bf16.msrb.mxu1 %v1423_v50  ;;  %569 = vmatpush.bf16.msrb.mxu2 %v1523_v59  ;;  %v1914_v50 = vld [vmem:[#allocation4 + $0x16c] sm:$0xf0]  ;;  %v1651_v59 = vor.u32 %v1880_v51, %v1648_v52  ;;  %v1752_v25 = vld [vmem:[#allocation4 + $0x138] sm:$0xf0]  ;;  %vm731_vm3 = vmor %vm2329_vm5, %vm2316_vm2 }
  0xa3   :  { %554 = vmatpush.bf16.msrb.mxu0 %v1411_v44  ;;  %540 = vmatpush.bf16.msrb.mxu3 %v1535_v1  ;;  %v1678_v44 = vld [vmem:[#allocation4 + $0xa0] sm:$0xf]  ;;  %v1775_v56 = vor.u32 %v1914_v50, %v1774_v48  ;;  %v1900_v1 = vld [vmem:[#allocation4 + $0x104] sm:$0xf]  ;;  %v1672_v48 = vld [vmem:[#allocation4 + $0x98] sm:$0xf0] }
  0xa4   :  { %v1917_v50 = vld [vmem:[#allocation4 + $0x18c] sm:$0xf] }
  0xa6   :  { %526 = vmatpush.bf16.msrb.mxu1 %v1407_v63  ;;  %v1876_v63 = vld [vmem:[#allocation4 + $0x44] sm:$0xf] }
  0xa7   :  { %555 = vmatpush.bf16.msrb.mxu0 %v1395_v55  ;;  %541 = vmatpush.bf16.msrb.mxu3 %v1519_v8  ;;  %v1679_v55 = vor.u32 %v1890_v45, %v1678_v44  ;;  %v1646_v8 = vld [vmem:[#allocation4 + $0x60] sm:$0xf]  ;;  %v1635_v11 = vor.u32 %v1876_v63, %v1632_v0  ;;  %v1784_v63 = vld [vmem:[#allocation4 + $0x178] sm:$0xf0] }
  0xaa   :  { %527 = vmatpush.bf16.msrb.mxu1 %v1391_v4  ;;  %v1720_v4 = vld [vmem:[#allocation4 + $0xf8] sm:$0xf0] }
  0xab   :  { %v1723_v17 = vor.u32 %v1897_v3, %v1720_v4  ;;  %v1659_v3 = vor.u32 %v1881_v61, %v1656_v49  ;;  %v1787_v4 = vor.u32 %v1913_v9, %v1784_v63 }
  0xeb   :  { %v2146_v10 = vpop.permute.xlu2 %761 }
  0xec   :  { %v2161_v62 = vsel %vm116_vm9, %v755_v53, %v2146_v10 }
  0xf3   :  { %v765_v44 = vpop.permute.xlu2 %764 }
  0xf4   :  { %v2153_v52 = vsel %vm121_vm10, %v2146_v10, %v765_v44  ;;  %v1640_v10 = vld [vmem:[#allocation4 + $0x58] sm:$0xf0]  ;;  %v1875_v44 = vld [vmem:[#allocation4 + $0x34] sm:$0xf0] }
  0xfb   :  { %v112_v16 = vpop.permute.xlu1 %111 }
  0xfc   :  { %v2130_v13 = vsel %vm116_vm9, %v102_v12, %v112_v16  ;;  %v1731_v12 = vor.u32 %v1900_v1, %v1728_v2  ;;  %v1670_v1 = vld [vmem:[#allocation4 + $0x88] sm:$0xf]  ;;  %v1887_v2 = vld [vmem:[#allocation4 + $0x94] sm:$0xf0] }
  0xfd   :  { %472 = vmatmul.bf16.vlgmr.msra.gmra.mxu0 %v2130_v13  ;;  %500 = vmatmul.bf16.vlgmr.msra.gmra.mxu2 %v2130_v13 }
  0xfe   :  { %1138 = vmatpush.bf16.msra.mxu2 %v1715_v14  ;;  %1154 = vmatpush.bf16.msra.mxu0 %v2084_v35  ;;  %v1918_v35 = vld [vmem:[#allocation4 + $0x18c] sm:$0xf0] }
  0xff   :  { %v1791_v43 = vor.u32 %v1918_v35, %v1790_v36  ;;  %v1882_v14 = vld [vmem:[#allocation4 + $0x6c] sm:$0xf0]  ;;  %v1889_v36 = vld [vmem:[#allocation4 + $0xac] sm:$0xf]  ;;  %v1688_v35 = vld [vmem:[#allocation4 + $0xb8] sm:$0xf0] }
 0x100   :  { %v1647_v23 = vor.u32 %v1882_v14, %v1646_v8  ;;  %v1691_v45 = vor.u32 %v1889_v36, %v1688_v35  ;;  %v1877_v8 = vld [vmem:[#allocation4 + $0x4c] sm:$0xf]  ;;  %v1671_v14 = vor.u32 %v1887_v2, %v1670_v1  ;;  %v1608_v36 = vld [vmem:[#allocation4 + $0x18] sm:$0xf0] }
 0x101   :  { %v1643_v18 = vor.u32 %v1877_v8, %v1640_v10  ;;  %v1901_v35 = vld [vmem:[#allocation4 + $0x10c] sm:$0xf] }
 0x102   :  { %1139 = vmatpush.bf16.msra.mxu2 %v1699_v21  ;;  %1155 = vmatpush.bf16.msra.mxu0 %v1795_v22  ;;  %v1893_v21 = vld [vmem:[#allocation4 + $0xcc] sm:$0xf]  ;;  %v1704_v22 = vld [vmem:[#allocation4 + $0xd8] sm:$0xf0] }
 0x103   :  { %v115_v31 = vpop.permute.xlu1 %114  ;;  %v1707_v30 = vor.u32 %v1893_v21, %v1704_v22  ;;  %v1782_v21 = vld [vmem:[#allocation4 + $0x168] sm:$0xf]  ;;  %v1915_v22 = vld [vmem:[#allocation4 + $0x174] sm:$0xf0] }
 0x104   :  { %v2136_v38 = vsel %vm121_vm10, %v112_v16, %v115_v31  ;;  %v1906_v16 = vld [vmem:[#allocation4 + $0x12c] sm:$0xf0]  ;;  %v1600_v31 = vld [vmem:[#allocation4 + $0x10] sm:$0xf0] }
 0x105   :  { %1588 = vmatmul.msk.bf16.vlgmr.msra.gmra.mxu1 %vm448_vm11, %v2136_v38  ;;  %1589 = vmatmul.msk.bf16.vlgmr.msra.gmra.mxu3 %vm448_vm11, %v2136_v38  ;;  %v1743_v7 = vor.u32 %v1906_v16, %v1742_v15  ;;  %v1603_v40 = vor.u32 %v1868_v29, %v1600_v31  ;;  %v1654_v16 = vld [vmem:[#allocation4 + $0x68] sm:$0xf] }
 0x106   :  { %1110 = vmatpush.bf16.msra.mxu3 %v1711_v28  ;;  %1126 = vmatpush.bf16.msra.mxu1 %v2081_v32  ;;  %v1886_v32 = vld [vmem:[#allocation4 + $0x8c] sm:$0xf0]  ;;  %v1766_v31 = vld [vmem:[#allocation4 + $0x148] sm:$0xf] }
 0x107   :  { %1140 = vmatpush.bf16.msra.mxu2 %v1683_v33  ;;  %1156 = vmatpush.bf16.msra.mxu0 %v1779_v34  ;;  %v1663_v5 = vor.u32 %v1886_v32, %v1662_v58  ;;  %v1902_v28 = vld [vmem:[#allocation4 + $0x10c] sm:$0xf0]  ;;  %v1718_v33 = vld [vmem:[#allocation4 + $0xe8] sm:$0xf]  ;;  %v1899_v34 = vld [vmem:[#allocation4 + $0xf4] sm:$0xf0] }
 0x108   :  { %v1727_v39 = vor.u32 %v1902_v28, %v1726_v27  ;;  %v1719_v41 = vor.u32 %v1899_v34, %v1718_v33  ;;  %v1638_v27 = vld [vmem:[#allocation4 + $0x48] sm:$0xf]  ;;  %v1879_v28 = vld [vmem:[#allocation4 + $0x54] sm:$0xf0]  ;;  %v1869_v34 = vld [vmem:[#allocation4 + $0xc] sm:$0xf] }
 0x109   :  { %v1911_v33 = vld [vmem:[#allocation4 + $0x154] sm:$0xf0] }
 0x10a   :  { %1111 = vmatpush.bf16.msra.mxu3 %v1695_v42  ;;  %1127 = vmatpush.bf16.msra.mxu1 %v1791_v43  ;;  %v1614_v42 = vld [vmem:[#allocation4 + $0x20] sm:$0xf]  ;;  %v1874_v43 = vld [vmem:[#allocation4 + $0x2c] sm:$0xf0] }
 0x10b   :  { %1141 = vmatpush.bf16.msra.mxu2 %v1667_v46  ;;  %1157 = vmatpush.bf16.msra.mxu0 %v1763_v47  ;;  %v1702_v46 = vld [vmem:[#allocation4 + $0xc8] sm:$0xf]  ;;  %v1895_v47 = vld [vmem:[#allocation4 + $0xd4] sm:$0xf0]  ;;  %v1615_v51 = vor.u32 %v1874_v43, %v1614_v42 }
 0x10c   :  { %v1703_v54 = vor.u32 %v1895_v47, %v1702_v46  ;;  %v1622_v43 = vld [vmem:[#allocation4 + $0x28] sm:$0xf]  ;;  %v1907_v46 = vld [vmem:[#allocation4 + $0x134] sm:$0xf0] }
 0x10d   :  { %556 = vmatmul.bf16.vlgmr.msrb.gmra.mxu0 %v2130_v13  ;;  %1591 = vmatmul.msk.bf16.vlgmr.msrb.gmra.mxu2 %vm448_vm11, %v2136_v38  ;;  %v1623_v47 = vor.u32 %v1875_v44, %v1622_v43 }
 0x10e   :  { %1112 = vmatpush.bf16.msra.mxu3 %v1679_v55  ;;  %1128 = vmatpush.bf16.msra.mxu1 %v1775_v56  ;;  %v1598_v55 = vld [vmem:[#allocation4] sm:$0xf]  ;;  %v1870_v56 = vld [vmem:[#allocation4 + $0xc] sm:$0xf0] }
 0x10f   :  { %1142 = vmatpush.bf16.msra.mxu2 %v1651_v59  ;;  %1158 = vmatpush.bf16.msra.mxu0 %v1747_v60  ;;  %v1686_v59 = vld [vmem:[#allocation4 + $0xa8] sm:$0xf]  ;;  %v1891_v60 = vld [vmem:[#allocation4 + $0xb4] sm:$0xf0]  ;;  %v1599_v0 = vor.u32 %v1870_v56, %v1598_v55  ;;  %v2176_v56 = vld [vmem:[#allocation6] sm:$0xf] }
 0x112   :  { %1113 = vmatpush.bf16.msra.mxu3 %v1663_v5  ;;  %1129 = vmatpush.bf16.msra.mxu1 %v1759_v6  ;;  %v1798_v5 = vld [vmem:[#allocation4 + $0x188] sm:$0xf]  ;;  %v1919_v6 = vld [vmem:[#allocation4 + $0x194] sm:$0xf0] }
 0x113   :  { %1143 = vmatpush.bf16.msra.mxu2 %v1635_v11  ;;  %1159 = vmatpush.bf16.msra.mxu0 %v1731_v12  ;;  %v1909_v11 = vld [vmem:[#allocation4 + $0x14c] sm:$0xf]  ;;  %v1768_v12 = vld [vmem:[#allocation4 + $0x158] sm:$0xf0]  ;;  %v1799_v15 = vor.u32 %v1919_v6, %v1798_v5 }
 0x114   :  { %v1771_v19 = vor.u32 %v1909_v11, %v1768_v12  ;;  %v581_v12 = vperm.slane %v2176_v56, 3 }
 0x115   :  { %528 = vmatmul.bf16.vlgmr.msrb.gmra.mxu1 %v2130_v13  ;;  %1590 = vmatmul.msk.bf16.vlgmr.msrb.gmra.mxu3 %vm448_vm11, %v2136_v38  ;;  %v1885_v13 = vld [vmem:[#allocation4 + $0x8c] sm:$0xf]  ;;  %v1800_v38 = vld [vmem:[#allocation4 + $0x198] sm:$0xf0] }
 0x116   :  { %1114 = vmatpush.bf16.msra.mxu3 %v1647_v23  ;;  %1130 = vmatpush.bf16.msra.mxu1 %v1743_v7  ;;  %v1675_v58 = vor.u32 %v1885_v13, %v1672_v48  ;;  %v1803_v32 = vor.u32 %v1917_v50, %v1800_v38  ;;  %v1873_v23 = vld [vmem:[#allocation4 + $0x2c] sm:$0xf]  ;;  %v1624_v7 = vld [vmem:[#allocation4 + $0x38] sm:$0xf0]  ;;  %v1606_v48 = vld [vmem:[#allocation4 + $0x8] sm:$0xf] }
 0x117   :  { %1194 = vmatpush.bf16.msrb.mxu0 %v1723_v17  ;;  %1144 = vmatpush.bf16.msra.mxu2 %v1619_v26  ;;  %v1883_v17 = vld [vmem:[#allocation4 + $0x74] sm:$0xf0]  ;;  %v1783_v26 = vor.u32 %v1915_v22, %v1782_v21  ;;  %v1627_v29 = vor.u32 %v1873_v23, %v1624_v7  ;;  %v1734_v38 = vld [vmem:[#allocation4 + $0x108] sm:$0xf] }
 0x118   :  { %v1871_v50 = vld [vmem:[#allocation4 + $0x14] sm:$0xf0] }
 0x119   :  { %v1607_v53 = vor.u32 %v1871_v50, %v1606_v48 }
 0x11a   :  { %1115 = vmatpush.bf16.msra.mxu3 %v1631_v37  ;;  %1131 = vmatpush.bf16.msra.mxu1 %v1727_v39  ;;  %v1736_v37 = vld [vmem:[#allocation4 + $0x118] sm:$0xf0]  ;;  %v1639_v39 = vor.u32 %v1879_v28, %v1638_v27 }
 0x11b   :  { %1195 = vmatpush.bf16.msrb.mxu0 %v1707_v30  ;;  %1145 = vmatpush.bf16.msra.mxu2 %v1603_v40  ;;  %v1755_v30 = vor.u32 %v1905_v24, %v1752_v25  ;;  %v1767_v40 = vor.u32 %v1911_v33, %v1766_v31  ;;  %v1739_v42 = vor.u32 %v1901_v35, %v1736_v37 }
 0x11d   :  { %1805 = vmatmul.msk.bf16.vlgmr.msra.gmra.mxu0 %vm448_vm11, %v2153_v52 }
 0x11e   :  { %1166 = vmatpush.bf16.msrb.mxu1 %v1719_v41  ;;  %1116 = vmatpush.bf16.msra.mxu3 %v1615_v51  ;;  %v1611_v41 = vor.u32 %v1869_v34, %v1608_v36  ;;  %v1903_v51 = vld [vmem:[#allocation4 + $0x114] sm:$0xf0] }
 0x11f   :  { %1196 = vmatpush.bf16.msrb.mxu0 %v1691_v45  ;;  %1210 = vmatpush.bf16.msrb.mxu2 %v2113_v57  ;;  %v1687_v57 = vor.u32 %v1891_v60, %v1686_v59  ;;  %v1750_v45 = vld [vmem:[#allocation4 + $0x128] sm:$0xf]  ;;  %v578_v59 = vperm.slane %v2176_v56, 0 }
 0x120   :  { %1146 = vmatmul.bf16.vlgmr.msra.gmra.mxu2 %v2161_v62  ;;  %v1751_v13 = vor.u32 %v1907_v46, %v1750_v45  ;;  %v2224_v45 = vld [vmem:[#allocation6] sm:$0xf] }
 0x122   :  { %1167 = vmatpush.bf16.msrb.mxu1 %v1703_v54  ;;  %1117 = vmatpush.bf16.msra.mxu3 %v1599_v0  ;;  %v1735_v54 = vor.u32 %v1903_v51, %v1734_v38  ;;  %v579_v0 = vperm.slane %v2176_v56, 1  ;;  %v1225_v38 = vperm.slane %v2224_v45, 1  ;;  %v1240_v51 = vld [vmem:[#allocation7] sm:$0xf] }
 0x123   :  { %1197 = vmatpush.bf16.msrb.mxu0 %v1675_v58  ;;  %1211 = vmatpush.bf16.msrb.mxu2 %v1803_v32  ;;  %v2178_v32 = vld [vmem:[#allocation7] sm:$0xf] }
 0x124   :  { %v596_v9 = vperm.slane %v2178_v32, 0  ;;  %v598_v36 = vperm.slane %v2178_v32, 2 }
 0x125   :  { %1118 = vmatmul.bf16.vlgmr.msra.gmra.mxu3 %v2161_v62  ;;  %1804 = vmatmul.msk.bf16.vlgmr.msra.gmra.mxu1 %vm448_vm11, %v2153_v52 }
 0x126   :  { %1168 = vmatpush.bf16.msrb.mxu1 %v1687_v57  ;;  %1182 = vmatpush.bf16.msrb.mxu3 %v2119_v20  ;;  %v1655_v20 = vor.u32 %v1883_v17, %v1654_v16 }
 0x127   :  { %1198 = vmatpush.bf16.msrb.mxu0 %v1659_v3  ;;  %1212 = vmatpush.bf16.msrb.mxu2 %v1787_v4  ;;  %v597_v3 = vperm.slane %v2178_v32, 1 }
 0x12a   :  { %1169 = vmatpush.bf16.msrb.mxu1 %v1671_v14  ;;  %1183 = vmatpush.bf16.msrb.mxu3 %v1799_v15 }
 0x12b   :  { %1199 = vmatpush.bf16.msrb.mxu0 %v1643_v18  ;;  %1213 = vmatpush.bf16.msrb.mxu2 %v1771_v19  ;;  %v599_v19 = vperm.slane %v2178_v32, 3  ;;  %v1243_v32 = vperm.slane %v1240_v51, 1 }
 0x12e   :  { %1170 = vmatpush.bf16.msrb.mxu1 %v1655_v20  ;;  %1184 = vmatpush.bf16.msrb.mxu3 %v1783_v26  ;;  %v580_v26 = vperm.slane %v2176_v56, 2  ;;  %v1224_v56 = vperm.slane %v2224_v45, 0 }
 0x12f   :  { %1200 = vmatpush.bf16.msrb.mxu0 %v1627_v29  ;;  %1214 = vmatpush.bf16.msrb.mxu2 %v1755_v30 }
 0x132   :  { %1171 = vmatpush.bf16.msrb.mxu1 %v1639_v39  ;;  %1185 = vmatpush.bf16.msrb.mxu3 %v1767_v40 }
 0x133   :  { %1201 = vmatpush.bf16.msrb.mxu0 %v1611_v41  ;;  %1215 = vmatpush.bf16.msrb.mxu2 %v1739_v42 }
 0x136   :  { %1202 = vmatmul.bf16.vlgmr.msrb.gmra.mxu0 %v2161_v62  ;;  %1807 = vmatmul.msk.bf16.vlgmr.msrb.gmra.mxu2 %vm448_vm11, %v2153_v52 }
 0x137   :  { %1172 = vmatpush.bf16.msrb.mxu1 %v1623_v47  ;;  %1186 = vmatpush.bf16.msrb.mxu3 %v1751_v13 }
 0x13b   :  { %1173 = vmatpush.bf16.msrb.mxu1 %v1607_v53  ;;  %1187 = vmatpush.bf16.msrb.mxu3 %v1735_v54 }
 0x13e   :  { %1174 = vmatmul.bf16.vlgmr.msrb.gmra.mxu1 %v2161_v62  ;;  %1806 = vmatmul.msk.bf16.vlgmr.msrb.gmra.mxu3 %vm448_vm11, %v2153_v52 }
 0x17a   :  { %v473_v55 = vpop.f32.mrf.mxu0 }
 0x180   :  { %v501_v58 = vpop.f32.mrf.mxu2 }
 0x182   :  { %v487_v60 = vpop.f32.mrf.mxu1  ;;  %v475_v61 = vpop.f32.mrf.mxu0 }
 0x183   :  { %v488_v49 = vadd.f32 %v487_v60, %v473_v55 }
 0x185   :  { %v586_v63 = vmul.f32 %v578_v59, %v488_v49 }
 0x187   :  { %v2183_v62 = vadd.f32 %v596_v9, %v586_v63 }
 0x188   :  { %v503_v57 = vpop.f32.mrf.mxu2  ;;  %v515_v52 = vpop.f32.mrf.mxu3 }
 0x189   :  { %v516_v1 = vadd.f32 %v515_v52, %v501_v58  ;;  %v612_v2 = vmax.f32 %v2183_v62, 0.0 }
 0x18a   :  { %v489_v4 = vpop.f32.mrf.mxu1  ;;  %v557_v8 = vpop.f32.mrf.mxu0 }
 0x18b   :  { %v587_v5 = vmul.f32 %v579_v0, %v516_v1  ;;  %v490_v6 = vadd.f32 %v489_v4, %v475_v61  ;;  %628 = vrot.lane.b32.xlu0 %v612_v2, %s2041_s3  ;;  %v1242_v61 = vperm.slane %v1240_v51, 0 }
 0x18d   :  { %v2190_v10 = vadd.f32 %v597_v3, %v587_v5  ;;  %v590_v11 = vmul.f32 %v578_v59, %v490_v6 }
 0x18f   :  { %v613_v14 = vmax.f32 %v2190_v10, 0.0  ;;  %v2198_v7 = vadd.f32 %v596_v9, %v590_v11  ;;  %v1227_v11 = vperm.slane %v2224_v45, 3 }
 0x190   :  { %v517_v15 = vpop.f32.mrf.mxu3  ;;  %v571_v16 = vpop.f32.mrf.mxu2 }
 0x191   :  { %v518_v17 = vadd.f32 %v517_v15, %v503_v57  ;;  %v572_v18 = vadd.f32 %v571_v16, %v557_v8  ;;  %630 = vrot.lane.b32.xlu1 %v613_v14, %s2041_s3  ;;  %v616_v28 = vmax.f32 %v2198_v7, 0.0 }
 0x192   :  { %v529_v21 = vpop.f32.mrf.mxu1  ;;  %v559_v20 = vpop.f32.mrf.mxu0 }
 0x193   :  { %v591_v22 = vmul.f32 %v579_v0, %v518_v17  ;;  %v589_v23 = vmul.f32 %v581_v12, %v572_v18  ;;  %v1245_v18 = vperm.slane %v1240_v51, 3 }
 0x195   :  { %v2200_v24 = vadd.f32 %v599_v19, %v589_v23  ;;  %v2202_v25 = vadd.f32 %v597_v3, %v591_v22 }
 0x197   :  { %v615_v27 = vmax.f32 %v2200_v24, 0.0  ;;  %v617_v29 = vmax.f32 %v2202_v25, 0.0 }
 0x198   :  { %v543_v30 = vpop.f32.mrf.mxu3  ;;  %v573_v31 = vpop.f32.mrf.mxu2 }
 0x199   :  { %v544_v33 = vadd.f32 %v543_v30, %v529_v21  ;;  %v574_v34 = vadd.f32 %v573_v31, %v559_v20  ;;  %634 = vrot.lane.b32.xlu0 %v615_v27, %s2041_s3  ;;  %636 = vrot.lane.b32.xlu1 %v616_v28, %s2041_s3  ;;  %v1226_v20 = vperm.slane %v2224_v45, 2 }
 0x19a   :  { %638 = vrot.lane.b32.xlu2 %v617_v29, %s2041_s3  ;;  %v531_v39 = vpop.f32.mrf.mxu1  ;;  %v1161_v46 = vpop.f32.mrf.mxu0 }
 0x19b   :  { %v588_v35 = vmul.f32 %v580_v26, %v544_v33  ;;  %v593_v37 = vmul.f32 %v581_v12, %v574_v34 }
 0x19d   :  { %v2218_v40 = vadd.f32 %v599_v19, %v593_v37  ;;  %v2220_v41 = vadd.f32 %v598_v36, %v588_v35 }
 0x19f   :  { %v619_v42 = vmax.f32 %v2218_v40, 0.0  ;;  %v614_v43 = vmax.f32 %v2220_v41, 0.0 }
 0x1a0   :  { %v545_v44 = vpop.f32.mrf.mxu3 }
 0x1a1   :  { %v546_v47 = vadd.f32 %v545_v44, %v531_v39  ;;  %642 = vrot.lane.b32.xlu1 %v619_v42, %s2041_s3 }
 0x1a2   :  { %632 = vrot.lane.b32.xlu2 %v614_v43, %s2041_s3  ;;  %v1133_v54 = vpop.f32.mrf.mxu1  ;;  %v1163_v49 = vpop.f32.mrf.mxu0 }
 0x1a3   :  { %v1147_v13 = vpop.f32.mrf.mxu2  ;;  %v592_v48 = vmul.f32 %v580_v26, %v546_v47 }
 0x1a4   :  { %v1162_v50 = vadd.f32 %v1161_v46, %v1147_v13 }
 0x1a5   :  { %v2233_v53 = vadd.f32 %v598_v36, %v592_v48  ;;  %v1244_v36 = vperm.slane %v1240_v51, 2 }
 0x1a6   :  { %v1233_v55 = vmul.f32 %v1225_v38, %v1162_v50 }
 0x1a7   :  { %v618_v58 = vmax.f32 %v2233_v53, 0.0 }
 0x1a8   :  { %v1119_v59 = vpop.f32.mrf.mxu3  ;;  %v2240_v63 = vadd.f32 %v1243_v32, %v1233_v55 }
 0x1a9   :  { %v1134_v60 = vadd.f32 %v1133_v54, %v1119_v59  ;;  %640 = vrot.lane.b32.xlu0 %v618_v58, %s2041_s3 }
 0x1aa   :  { %v1259_v52 = vmax.f32 %v2240_v63, 0.0  ;;  %v1135_v3 = vpop.f32.mrf.mxu1 }
 0x1ab   :  { %v1232_v9 = vmul.f32 %v1224_v56, %v1134_v60  ;;  %v1149_v57 = vpop.f32.mrf.mxu2 }
 0x1ac   :  { %v1164_v35 = vadd.f32 %v1163_v49, %v1149_v57 }
 0x1ad   :  { %v2242_v0 = vadd.f32 %v1242_v61, %v1232_v9 }
 0x1ae   :  { %v1237_v47 = vmul.f32 %v1225_v38, %v1164_v35 }
 0x1af   :  { %v1258_v1 = vmax.f32 %v2242_v0, 0.0 }
 0x1b0   :  { %v1121_v4 = vpop.f32.mrf.mxu3  ;;  %v2278_v55 = vadd.f32 %v1243_v32, %v1237_v47 }
 0x1b1   :  { %v1136_v5 = vadd.f32 %v1135_v3, %v1121_v4  ;;  %1276 = vrot.lane.b32.xlu0 %v1259_v52, %s2041_s3  ;;  %1274 = vrot.lane.b32.xlu2 %v1258_v1, %s2041_s3 }
 0x1b2   :  { %v1263_v59 = vmax.f32 %v2278_v55, 0.0 }
 0x1b3   :  { %v1203_v6 = vpop.f32.mrf.mxu0  ;;  %v1236_v8 = vmul.f32 %v1224_v56, %v1136_v5 }
 0x1b5   :  { %v2253_v12 = vadd.f32 %v1242_v61, %v1236_v8 }
 0x1b7   :  { %v1262_v17 = vmax.f32 %v2253_v12, 0.0 }
 0x1b9   :  { %v1217_v15 = vpop.f32.mrf.mxu2  ;;  %1282 = vrot.lane.b32.xlu0 %v1262_v17, %s2041_s3 }
 0x1ba   :  { %v1218_v16 = vadd.f32 %v1217_v15, %v1203_v6 }
 0x1bb   :  { %v1175_v22 = vpop.f32.mrf.mxu1  ;;  %v1205_v23 = vpop.f32.mrf.mxu0 }
 0x1bc   :  { %v1235_v19 = vmul.f32 %v1227_v11, %v1218_v16 }
 0x1be   :  { %v2259_v21 = vadd.f32 %v1245_v18, %v1235_v19 }
 0x1c0   :  { %v1261_v26 = vmax.f32 %v2259_v21, 0.0 }
 0x1c1   :  { %v1189_v30 = vpop.f32.mrf.mxu3  ;;  %v1219_v31 = vpop.f32.mrf.mxu2 }
 0x1c2   :  { %v1190_v33 = vadd.f32 %v1189_v30, %v1175_v22  ;;  %v1220_v34 = vadd.f32 %v1219_v31, %v1205_v23  ;;  %1280 = vrot.lane.b32.xlu2 %v1261_v26, %s2041_s3 }
 0x1c3   :  { %v1177_v48 = vpop.f32.mrf.mxu1 }
 0x1c4   :  { %v1234_v37 = vmul.f32 %v1226_v20, %v1190_v33  ;;  %v1239_v39 = vmul.f32 %v1227_v11, %v1220_v34 }
 0x1c6   :  { %v2266_v44 = vadd.f32 %v1244_v36, %v1234_v37  ;;  %v2268_v46 = vadd.f32 %v1245_v18, %v1239_v39 }
 0x1c8   :  { %v1260_v45 = vmax.f32 %v2266_v44, 0.0  ;;  %v1265_v13 = vmax.f32 %v2268_v46, 0.0 }
 0x1c9   :  { %v1191_v50 = vpop.f32.mrf.mxu3 }
 0x1ca   :  { %v1192_v54 = vadd.f32 %v1191_v50, %v1177_v48  ;;  %1278 = vrot.lane.b32.xlu1 %v1260_v45, %s2041_s3  ;;  %1288 = vrot.lane.b32.xlu0 %v1265_v13, %s2041_s3 }
 0x1cc   :  { %v1238_v51 = vmul.f32 %v1226_v20, %v1192_v54 }
 0x1ce   :  { %v2280_v56 = vadd.f32 %v1244_v36, %v1238_v51 }
 0x1d0   :  { %v1264_v38 = vmax.f32 %v2280_v56, 0.0 }
 0x1d2   :  { %1286 = vrot.lane.b32.xlu2 %v1264_v38, %s2041_s3  ;;  %1284 = vrot.lane.b32.xlu1 %v1263_v59, %s2041_s3 }
 0x1f4   :  { %v639_v9 = vpop.permute.xlu2 %638 }
 0x1fc   :  { %v633_v8 = vpop.permute.xlu2 %632 }
 0x1fd   :  { %v629_v61 = vpop.permute.xlu0 %628 }
 0x203   :  { %v631_v60 = vpop.permute.xlu1 %630 }
 0x204   :  { %v645_v4 = vsel %vm644_vm12, %v629_v61, %v631_v60  ;;  %v646_v11 = vsel %vm644_vm12, %v631_v60, %v633_v8 }
 0x205   :  { %v659_v15 = vadd.f32 %v645_v4, %v612_v2  ;;  %v660_v7 = vadd.f32 %v646_v11, %v613_v14 }
 0x207   :  { %v676_v40 = vrot.slane %v659_v15, 1  ;;  %v679_v41 = vrot.slane %v660_v7, 1 }
 0x20b   :  { %v637_v49 = vpop.permute.xlu1 %636  ;;  %v635_v57 = vpop.permute.xlu0 %634 }
 0x20c   :  { %v648_v32 = vsel %vm644_vm12, %v637_v49, %v639_v9  ;;  %v647_v16 = vsel %vm644_vm12, %v633_v8, %v635_v57  ;;  %v662_v18 = vadd.f32 %v635_v57, %v615_v27 }
 0x20d   :  { %v663_v5 = vadd.f32 %v648_v32, %v616_v28  ;;  %v661_v28 = vadd.f32 %v647_v16, %v614_v43 }
 0x20f   :  { %v677_v19 = vrot.slane %v663_v5, 1  ;;  %v682_v43 = vrot.slane %v661_v28, 1 }
 0x211   :  { %v678_v24 = vsel %vm675_vm13, %v676_v40, %v677_v19  ;;  %v700_v20 = vadd.f32 %v677_v19, %v663_v5 }
 0x212   :  { %v696_v36 = vadd.f32 %v678_v24, %v659_v15 }
 0x213   :  { %v643_v3 = vpop.permute.xlu1 %642  ;;  %v708_v50 = vmul.f32 0.25, %v700_v20 }
 0x214   :  { %v666_v6 = vadd.f32 %v643_v3, %v619_v42  ;;  %v685_v42 = vrot.slane %v662_v18, 1  ;;  %v704_v61 = vmul.f32 0.25, %v696_v36 }
 0x216   :  { %v686_v22 = vrot.slane %v666_v6, 1 }
 0x218   :  { %v687_v27 = vsel %vm675_vm13, %v685_v42, %v686_v22  ;;  %v703_v30 = vadd.f32 %v686_v22, %v666_v6 }
 0x219   :  { %v699_v25 = vadd.f32 %v687_v27, %v662_v18  ;;  %v1275_v18 = vpop.permute.xlu2 %1274 }
 0x21a   :  { %v711_v54 = vmul.f32 0.25, %v703_v30 }
 0x21b   :  { %v641_v23 = vpop.permute.xlu0 %640  ;;  %v707_v49 = vmul.f32 0.25, %v699_v25 }
 0x21c   :  { %v649_v62 = vsel %vm644_vm12, %v639_v9, %v641_v23  ;;  %v650_v2 = vsel %vm644_vm12, %v641_v23, %v643_v3  ;;  %v726_v9 = vld [vmem:[%s2437_s4 + $0x10] sm:$0xff]  ;;  %v732_v3 = vld [vmem:[%s2437_s4 + $0x18] sm:$0xff] }
 0x21d   :  { %v664_v10 = vadd.f32 %v649_v62, %v617_v29  ;;  %v665_v14 = vadd.f32 %v650_v2, %v618_v58 }
 0x21f   :  { %v680_v31 = vrot.slane %v664_v10, 1  ;;  %v683_v33 = vrot.slane %v665_v14, 1 }
 0x221   :  { %v681_v53 = vsel %vm675_vm13, %v679_v41, %v680_v31  ;;  %v684_v58 = vsel %vm675_vm13, %v682_v43, %v683_v33  ;;  %v701_v35 = vadd.f32 %v680_v31, %v664_v10  ;;  %v702_v37 = vadd.f32 %v683_v33, %v665_v14  ;;  %v1281_v22 = vpop.permute.xlu2 %1280 }
 0x222   :  { %v697_v47 = vadd.f32 %v681_v53, %v660_v7  ;;  %v698_v48 = vadd.f32 %v684_v58, %v661_v28  ;;  %v1307_v28 = vadd.f32 %v1281_v22, %v1261_v26  ;;  %v1812_v58 = vld [vmem:[%s2437_s4 + $0x38] sm:$0xff] }
 0x223   :  { %v709_v51 = vmul.f32 0.25, %v701_v35  ;;  %v710_v60 = vmul.f32 0.25, %v702_v37  ;;  %v1277_v16 = vpop.permute.xlu0 %1276 }
 0x224   :  { %v705_v32 = vmul.f32 0.25, %v697_v47  ;;  %v706_v57 = vmul.f32 0.25, %v698_v48  ;;  %v1329_v14 = vrot.slane %v1307_v28, 1  ;;  %v1290_v21 = vsel %vm644_vm12, %v1275_v18, %v1277_v16 }
 0x225   :  { %v714_v4 = vpack.c.bf16 %v709_v51, %v708_v50  ;;  %v715_v5 = vpack.c.bf16 %v711_v54, %v710_v60  ;;  %v1304_v44 = vadd.f32 %v1290_v21, %v1258_v1 }
 0x226   :  { %v712_v8 = vpack.c.bf16 %v705_v32, %v704_v61  ;;  %v713_v11 = vpack.c.bf16 %v707_v49, %v706_v57  ;;  %v1810_v32 = vld [vmem:[%s2437_s4 + $0x30] sm:$0xff] }
 0x227   :  { %v727_v15 = vsel %vm725_vm6, %v714_v4, %v726_v9  ;;  %v733_v19 = vsel %vm731_vm3, %v715_v5, %v732_v3 }
 0x228   :  { %716 = vst [vmem:[%s2437_s4] sm:$0xff] %v712_v8 }
 0x229   :  { %719 = vst.msk [vmem:[%s2437_s4 + $0x8] sm:$0xff] %vm2349_vm7, %v713_v11 }
 0x22a   :  { %728 = vst [vmem:[%s2437_s4 + $0x10] sm:$0xff] %v727_v15 }
 0x22b   :  { %734 = vst [vmem:[%s2437_s4 + $0x18] sm:$0xff] %v733_v19  ;;  %v1283_v7 = vpop.permute.xlu0 %1282 }
 0x22c   :  { %v1287_v40 = vpop.permute.xlu2 %1286 }
 0x23c   :  { %v1279_v42 = vpop.permute.xlu1 %1278  ;;  %v1289_v23 = vpop.permute.xlu0 %1288 }
 0x23d   :  { %v1292_v62 = vsel %vm644_vm12, %v1279_v42, %v1281_v22  ;;  %v1295_v2 = vsel %vm644_vm12, %v1287_v40, %v1289_v23  ;;  %v1311_v24 = vadd.f32 %v1289_v23, %v1265_v13  ;;  %v1291_v20 = vsel %vm644_vm12, %v1277_v16, %v1279_v42 }
 0x23e   :  { %v1306_v27 = vadd.f32 %v1292_v62, %v1260_v45  ;;  %v1310_v10 = vadd.f32 %v1295_v2, %v1264_v38  ;;  %v1305_v38 = vadd.f32 %v1291_v20, %v1259_v52  ;;  %v1320_v52 = vrot.slane %v1304_v44, 1 }
 0x23f   :  { %v1330_v41 = vrot.slane %v1311_v24, 1 }
 0x240   :  { %v1326_v26 = vrot.slane %v1306_v27, 1  ;;  %v1327_v43 = vrot.slane %v1310_v10, 1  ;;  %v1323_v50 = vrot.slane %v1305_v38, 1 }
 0x241   :  { %v1331_v30 = vsel %vm675_vm13, %v1329_v14, %v1330_v41  ;;  %v1347_v31 = vadd.f32 %v1330_v41, %v1311_v24 }
 0x242   :  { %v1328_v46 = vsel %vm675_vm13, %v1326_v26, %v1327_v43  ;;  %v1343_v13 = vadd.f32 %v1331_v30, %v1307_v28  ;;  %v1346_v33 = vadd.f32 %v1327_v43, %v1310_v10 }
 0x243   :  { %v1342_v45 = vadd.f32 %v1328_v46, %v1306_v27  ;;  %v1355_v56 = vmul.f32 0.25, %v1347_v31 }
 0x244   :  { %v1351_v36 = vmul.f32 0.25, %v1343_v13  ;;  %v1354_v25 = vmul.f32 0.25, %v1346_v33  ;;  %v1285_v53 = vpop.permute.xlu1 %1284 }
 0x245   :  { %v1350_v35 = vmul.f32 0.25, %v1342_v45  ;;  %v1293_v37 = vsel %vm644_vm12, %v1283_v7, %v1285_v53  ;;  %v1294_v47 = vsel %vm644_vm12, %v1285_v53, %v1287_v40 }
 0x246   :  { %v1359_v48 = vpack.c.bf16 %v1355_v56, %v1354_v25  ;;  %v1308_v0 = vadd.f32 %v1293_v37, %v1262_v17  ;;  %v1309_v63 = vadd.f32 %v1294_v47, %v1263_v59 }
 0x247   :  { %v1357_v1 = vpack.c.bf16 %v1351_v36, %v1350_v35 }
 0x248   :  { %v1367_v54 = vsel %vm731_vm3, %v1359_v48, %v1812_v58  ;;  %v1321_v51 = vrot.slane %v1308_v0, 1  ;;  %v1324_v60 = vrot.slane %v1309_v63, 1 }
 0x249   :  { %1809 = vst.msk [vmem:[%s2437_s4 + $0x28] sm:$0xff] %vm2349_vm7, %v1357_v1 }
 0x24a   :  { %1813 = vst [vmem:[%s2437_s4 + $0x38] sm:$0xff] %v1367_v54  ;;  %v1322_v12 = vsel %vm675_vm13, %v1320_v52, %v1321_v51  ;;  %v1325_v17 = vsel %vm675_vm13, %v1323_v50, %v1324_v60  ;;  %v1344_v55 = vadd.f32 %v1321_v51, %v1308_v0  ;;  %v1345_v59 = vadd.f32 %v1324_v60, %v1309_v63 }
 0x24b   :  { %v1340_v39 = vadd.f32 %v1322_v12, %v1304_v44  ;;  %v1341_v61 = vadd.f32 %v1325_v17, %v1305_v38 }
 0x24c   :  { %v1352_v49 = vmul.f32 0.25, %v1344_v55  ;;  %v1353_v9 = vmul.f32 0.25, %v1345_v59 }
 0x24d   :  { %v1348_v57 = vmul.f32 0.25, %v1340_v39  ;;  %v1349_v3 = vmul.f32 0.25, %v1341_v61 }
 0x24e   :  { %v1358_v4 = vpack.c.bf16 %v1353_v9, %v1352_v49 }
 0x24f   :  { %v1356_v5 = vpack.c.bf16 %v1349_v3, %v1348_v57 }
 0x250   :  { %v1364_v6 = vsel %vm725_vm6, %v1358_v4, %v1810_v32 }
 0x251   :  { %1808 = vst [vmem:[%s2437_s4 + $0x20] sm:$0xff] %v1356_v5 }
 0x252   :  { %1811 = vst [vmem:[%s2437_s4 + $0x30] sm:$0xff] %v1364_v6 }
 0x253   :  { %1373 = vsyncpa [#allocation3], 1 }
 0x254   :  { %1374 = vsyncpa [#allocation5], 1 }
 0x255   :  { %1375 = vsyncpa [#allocation8], 1 }

</bundles_post_ra>
